<compile_context>
chip_gen: v7x
topology: tpu7x:2x2x1
jax: 0.10.0
libtpu: 0.0.40
codegen_flags: <defaults>
</compile_context>

<pallas_src>
import functools

import jax
import jax.numpy as jnp
from jax.experimental import pallas as pl
from jax.experimental.pallas import tpu as pltpu


def _round_up(x, m):
    return ((x + m - 1) // m) * m


def _frame_mse_kernel(y_pred_ref, y_true_ref, out_ref, acc_ref, *,
                      B, T, tm, tn, acc_n, nb, nt, mask_rows, mask_cols):
    """One (tm, tn) tile of the squared-error reduction.

    grid = (row_chunks [parallel], col_chunks [arbitrary / reduction]).
    acc_ref: (tm, acc_n) f32 accumulator, re-initialised per row chunk.
    out_ref: (1, 8, 128) f32 per-row-chunk partial sums (summed in wrapper).
    """
    i = pl.program_id(0)
    j = pl.program_id(1)

    @pl.when(j == 0)
    def _init():
        acc_ref[...] = jnp.zeros_like(acc_ref)

    yp = y_pred_ref[...].astype(jnp.float32)      # (tm, tn), per-tile cast (VPU)
    yt = y_true_ref[...]                          # (tm, 1) f32, lane-broadcast
    d = yt - yp                                   # (tm, tn)

    n_chunks = tn // acc_n

    def _accumulate(dv):
        # Fold n_chunks lane-chunks into one accumulator RMW (cuts vst traffic).
        d2 = dv * dv
        partial = d2[:, 0:acc_n]
        for c in range(1, n_chunks):
            partial = partial + d2[:, c * acc_n:(c + 1) * acc_n]
        acc_ref[...] += partial

    if mask_rows or mask_cols:
        if mask_rows and mask_cols:
            is_edge = jnp.logical_or(i == nb - 1, j == nt - 1)
        elif mask_rows:
            is_edge = i == nb - 1
        else:
            is_edge = j == nt - 1

        @pl.when(jnp.logical_not(is_edge))
        def _interior():
            _accumulate(d)          # no iota/compare/select in steady state

        @pl.when(is_edge)
        def _edge():
            dm = d
            if mask_rows:
                row = i * tm + jax.lax.broadcasted_iota(jnp.int32, (tm, tn), 0)
                dm = jnp.where(row < B, dm, 0.0)
            if mask_cols:
                col = j * tn + jax.lax.broadcasted_iota(jnp.int32, (tm, tn), 1)
                dm = jnp.where(col < T, dm, 0.0)
            _accumulate(dm)         # select BEFORE square: OOB garbage never summed
    else:
        _accumulate(d)

    @pl.when(j == nt - 1)
    def _finalize():
        # Fold (tm, acc_n) -> (8, 128) with pure VPU adds (no cross-lane XLU),
        # write one unmasked lane-dense block; the wrapper sums the partials.
        a = acc_ref[...]
        r = a[:, 0:128]
        for c in range(1, acc_n // 128):
            r = r + a[:, c * 128:(c + 1) * 128]
        s = r[0:8, :]
        for c in range(1, tm // 8):
            s = s + r[c * 8:(c + 1) * 8, :]
        out_ref[0] = s


def frame_mse_pallas(y_pred, y_true, *, target_tile_bytes=2 * 1024 * 1024):
    """y_pred: (B, 1, T); y_true: (B,). Returns scalar f32 MSE via Pallas."""
    yp = jnp.squeeze(y_pred, axis=1)                        # (B, T), native dtype
    yt = jnp.asarray(y_true, jnp.float32).reshape(-1, 1)    # (B, 1) f32 (tiny)
    B, T = yp.shape
    itemsize = jnp.dtype(yp.dtype).itemsize

    # Row tile: whole (8-rounded) batch when small, 256-row chunks otherwise.
    tm = min(_round_up(B, 8), 256)
    nb = pl.cdiv(B, tm)

    # Lane tile: byte-targeted (~target_tile_bytes per tile, lane-dense multiple
    # of 128); multiple of 512 when possible so the accumulator fold uses
    # 512-lane chunks. No requirement that tn divides T (cdiv grid + mask).
    T_pad = _round_up(T, 128)
    tn = min(T_pad, max(512, (target_tile_bytes // (tm * itemsize)) // 128 * 128))
    if tn >= 512:
        tn = (tn // 512) * 512
        acc_n = 512
    else:
        acc_n = tn
    nt = pl.cdiv(T, tn)

    mask_rows = (B % tm) != 0
    mask_cols = (T % tn) != 0

    kernel = functools.partial(
        _frame_mse_kernel, B=B, T=T, tm=tm, tn=tn, acc_n=acc_n,
        nb=nb, nt=nt, mask_rows=mask_rows, mask_cols=mask_cols)

    partials = pl.pallas_call(
        kernel,
        out_shape=jax.ShapeDtypeStruct((nb, 8, 128), jnp.float32),
        grid_spec=pltpu.PrefetchScalarGridSpec(
            num_scalar_prefetch=0,
            grid=(nb, nt),
            in_specs=[
                pl.BlockSpec((tm, tn), lambda i, j: (i, j)),   # y_pred tiles
                pl.BlockSpec((tm, 1), lambda i, j: (i, 0)),    # y_true (row block only)
            ],
            out_specs=pl.BlockSpec((1, 8, 128), lambda i, j: (i, 0, 0)),
            scratch_shapes=[pltpu.VMEM((tm, acc_n), jnp.float32)],
        ),
        compiler_params=pltpu.CompilerParams(
            # Row chunks are independent (per-chunk partial output) -> parallel
            # (uses both TCs on v7x); column axis is the reduction -> arbitrary.
            dimension_semantics=("parallel", "arbitrary"),
            vmem_limit_bytes=32 * 1024 * 1024,
        ),
        cost_estimate=pl.CostEstimate(
            flops=3 * B * T,
            transcendentals=0,
            bytes_accessed=B * T * itemsize + B * 4 + nb * 8 * 128 * 4,
        ),
    )(yp, yt)

    # Tiny XLA reduce over nb*8*128 partials; divide by the true element count.
    return jnp.sum(partials) * jnp.float32(1.0 / (B * T))


def frame_mse_ref(y_pred, y_true):
    yp = jnp.squeeze(y_pred, axis=1).astype(jnp.float32)
    yt = jnp.asarray(y_true, jnp.float32)[:, None]
    return jnp.mean((yt - yp) ** 2)


def frame_mse(y_pred, y_true, *, min_bytes_for_pallas=4 * 1024 * 1024):
    """Dispatcher: small problems are faster as a fused XLA reduce."""
    B = y_pred.shape[0]
    T = y_pred.shape[-1]
    nbytes = B * T * jnp.dtype(y_pred.dtype).itemsize
    if nbytes < min_bytes_for_pallas:
        return frame_mse_ref(y_pred, y_true)
    return frame_mse_pallas(y_pred, y_true)


if __name__ == "__main__":
    key = jax.random.PRNGKey(0)
    k1, k2, k3, k4, k5, k6 = jax.random.split(key, 6)

    # Tiny shape matching the module's minimal usage (single masked tile).
    B, T = 2, 8
    y_pred = jax.random.normal(k1, (B, 1, T), dtype=jnp.float32)
    y_true = jax.random.normal(k2, (B,), dtype=jnp.float32)
    loss = frame_mse_pallas(y_pred, y_true)
    jax.block_until_ready(loss)
    ref = frame_mse_ref(y_pred, y_true)
    assert jnp.allclose(loss, ref, rtol=1e-5, atol=1e-6), (loss, ref)

    # Unaligned B and T, no wrapper padding: single edge tile, full masking.
    B2, T2 = 5, 2500
    y_pred2 = jax.random.normal(k3, (B2, 1, T2), dtype=jnp.float32)
    y_true2 = jax.random.normal(k4, (B2,), dtype=jnp.float32)
    loss2 = frame_mse_pallas(y_pred2, y_true2)
    jax.block_until_ready(loss2)
    ref2 = frame_mse_ref(y_pred2, y_true2)
    assert jnp.allclose(loss2, ref2, rtol=1e-5, atol=1e-6), (loss2, ref2)

    # bf16 input, multi-step reduction: interior (unmasked) + edge (masked) tiles.
    B3, T3 = 24, 6000
    y_pred3 = jax.random.normal(k5, (B3, 1, T3), dtype=jnp.bfloat16)
    y_true3 = jax.random.normal(k6, (B3,), dtype=jnp.float32)
    loss3 = frame_mse_pallas(y_pred3, y_true3)
    jax.block_until_ready(loss3)
    ref3 = frame_mse_ref(y_pred3, y_true3)
    assert jnp.allclose(loss3, ref3, rtol=1e-4, atol=1e-6), (loss3, ref3)

    # Dispatcher sanity (small -> fused XLA path).
    d = frame_mse(y_pred, y_true)
    jax.block_until_ready(d)
    assert jnp.allclose(d, ref, rtol=1e-5, atol=1e-6), (d, ref)

    print("KERNEL_OK")
</pallas_src>

<mosaic_0001>
module attributes {stable_mosaic.version = 11 : i64} {
  func.func @_frame_mse_kernel(%arg0: i32, %arg1: i32, %arg2: memref<8x128xf32, #tpu.memory_space<vmem>>, %arg3: memref<8x1xf32, #tpu.memory_space<vmem>>, %arg4: memref<1x8x128xf32, #tpu.memory_space<vmem>>, %arg5: memref<8x128xf32, #tpu.memory_space<vmem>>) attributes {dimension_semantics = [#tpu.dimension_semantics<parallel>, #tpu.dimension_semantics<arbitrary>], iteration_bounds = array<i64: 1, 1>, scalar_prefetch = 0 : i64, scratch_operands = 1 : i64, tpu.core_type = #tpu.core_type<tc>, window_params = [{transform_indices = @transform_0, window_bounds = array<i64: 8, 128>}, {transform_indices = @transform_1, window_bounds = array<i64: 8, 1>}, {transform_indices = @transform_2, window_bounds = array<i64: 1, 8, 128>}]} {
    %c0_i32 = arith.constant 0 : i32
    %0 = arith.cmpi eq, %arg1, %c0_i32 : i32
    %1 = arith.extui %0 : i1 to i32
    %c0_i32_0 = arith.constant 0 : i32
    %2 = arith.cmpi ne, %1, %c0_i32_0 : i32
    scf.if %2 {
      %cst = arith.constant 0.000000e+00 : f32
      %18 = vector.broadcast %cst : f32 to vector<8x128xf32>
      %c0_10 = arith.constant 0 : index
      %c0_11 = arith.constant 0 : index
      %19 = vector.load %arg5[%c0_10, %c0_11] : memref<8x128xf32, #tpu.memory_space<vmem>>, vector<8x128xf32>
      tpu.vector_store %arg5[%c0_10, %c0_11], %18 {strides = array<i32>} : memref<8x128xf32, #tpu.memory_space<vmem>>, vector<8x128xf32>,
    } else {
    }
    %c0 = arith.constant 0 : index
    %c0_1 = arith.constant 0 : index
    %3 = vector.load %arg2[%c0, %c0_1] : memref<8x128xf32, #tpu.memory_space<vmem>>, vector<8x128xf32>
    %c0_2 = arith.constant 0 : index
    %c0_3 = arith.constant 0 : index
    %4 = vector.load %arg3[%c0_2, %c0_3] : memref<8x1xf32, #tpu.memory_space<vmem>>, vector<8x1xf32>
    %5 = vector.broadcast %4 : vector<8x1xf32> to vector<8x128xf32>
    %6 = arith.subf %5, %3 : vector<8x128xf32>
    %c0_i32_4 = arith.constant 0 : i32
    %7 = arith.cmpi eq, %arg0, %c0_i32_4 : i32
    %c0_i32_5 = arith.constant 0 : i32
    %8 = arith.cmpi eq, %arg1, %c0_i32_5 : i32
    %9 = arith.ori %7, %8 : i1
    %true = arith.constant true
    %10 = arith.xori %9, %true : i1
    %11 = arith.extui %10 : i1 to i32
    %c0_i32_6 = arith.constant 0 : i32
    %12 = arith.cmpi ne, %11, %c0_i32_6 : i32
    scf.if %12 {
      %18 = arith.mulf %6, %6 : vector<8x128xf32>
      %c0_10 = arith.constant 0 : index
      %c0_11 = arith.constant 0 : index
      %19 = vector.load %arg5[%c0_10, %c0_11] : memref<8x128xf32, #tpu.memory_space<vmem>>, vector<8x128xf32>
      %20 = arith.addf %19, %18 : vector<8x128xf32>
      %c0_12 = arith.constant 0 : index
      %c0_13 = arith.constant 0 : index
      %21 = vector.load %arg5[%c0_12, %c0_13] : memref<8x128xf32, #tpu.memory_space<vmem>>, vector<8x128xf32>
      tpu.vector_store %arg5[%c0_12, %c0_13], %20 {strides = array<i32>} : memref<8x128xf32, #tpu.memory_space<vmem>>, vector<8x128xf32>,
    } else {
    }
    %13 = arith.extui %9 : i1 to i32
    %c0_i32_7 = arith.constant 0 : i32
    %14 = arith.cmpi ne, %13, %c0_i32_7 : i32
    scf.if %14 {
      %c8_i32 = arith.constant 8 : i32
      %18 = arith.muli %arg0, %c8_i32 : i32
      %19 = tpu.iota {dimensions = array<i32: 0>} : vector<8x128xi32>
      %20 = vector.broadcast %18 : i32 to vector<8x128xi32>
      %21 = arith.addi %20, %19 : vector<8x128xi32>
      %c2_i32 = arith.constant 2 : i32
      %22 = vector.broadcast %c2_i32 : i32 to vector<8x128xi32>
      %23 = arith.cmpi slt, %21, %22 : vector<8x128xi32>
      %cst = arith.constant 0.000000e+00 : f32
      %24 = vector.broadcast %cst : f32 to vector<8x128xf32>
      %25 = arith.select %23, %6, %24 : vector<8x128xi1>, vector<8x128xf32>
      %c128_i32 = arith.constant 128 : i32
      %26 = arith.muli %arg1, %c128_i32 : i32
      %27 = tpu.iota {dimensions = array<i32: 1>} : vector<8x128xi32>
      %28 = vector.broadcast %26 : i32 to vector<8x128xi32>
      %29 = arith.addi %28, %27 : vector<8x128xi32>
      %c8_i32_10 = arith.constant 8 : i32
      %30 = vector.broadcast %c8_i32_10 : i32 to vector<8x128xi32>
      %31 = arith.cmpi slt, %29, %30 : vector<8x128xi32>
      %cst_11 = arith.constant 0.000000e+00 : f32
      %32 = vector.broadcast %cst_11 : f32 to vector<8x128xf32>
      %33 = arith.select %31, %25, %32 : vector<8x128xi1>, vector<8x128xf32>
      %34 = arith.mulf %33, %33 : vector<8x128xf32>
      %c0_12 = arith.constant 0 : index
      %c0_13 = arith.constant 0 : index
      %35 = vector.load %arg5[%c0_12, %c0_13] : memref<8x128xf32, #tpu.memory_space<vmem>>, vector<8x128xf32>
      %36 = arith.addf %35, %34 : vector<8x128xf32>
      %c0_14 = arith.constant 0 : index
      %c0_15 = arith.constant 0 : index
      %37 = vector.load %arg5[%c0_14, %c0_15] : memref<8x128xf32, #tpu.memory_space<vmem>>, vector<8x128xf32>
      tpu.vector_store %arg5[%c0_14, %c0_15], %36 {strides = array<i32>} : memref<8x128xf32, #tpu.memory_space<vmem>>, vector<8x128xf32>,
    } else {
    }
    %c0_i32_8 = arith.constant 0 : i32
    %15 = arith.cmpi eq, %arg1, %c0_i32_8 : i32
    %16 = arith.extui %15 : i1 to i32
    %c0_i32_9 = arith.constant 0 : i32
    %17 = arith.cmpi ne, %16, %c0_i32_9 : i32
    scf.if %17 {
      %c0_10 = arith.constant 0 : index
      %c0_11 = arith.constant 0 : index
      %18 = vector.load %arg5[%c0_10, %c0_11] : memref<8x128xf32, #tpu.memory_space<vmem>>, vector<8x128xf32>
      %c0_12 = arith.constant 0 : index
      %c0_13 = arith.constant 0 : index
      %c0_14 = arith.constant 0 : index
      %19 = vector.load %arg4[%c0_12, %c0_13, %c0_14] : memref<1x8x128xf32, #tpu.memory_space<vmem>>, vector<1x8x128xf32>
      %20 = vector.shape_cast %19 : vector<1x8x128xf32> to vector<8x128xf32>
      %21 = vector.shape_cast %18 : vector<8x128xf32> to vector<1x8x128xf32>
      tpu.vector_store %arg4[%c0_12, %c0_13, %c0_14], %21 {strides = array<i32>} : memref<1x8x128xf32, #tpu.memory_space<vmem>>, vector<1x8x128xf32>,
    } else {
    }
    return
  }
  func.func @transform_0(%arg0: i32, %arg1: i32) -> (i32, i32) {
    %c0_i32 = arith.constant 0 : i32
    return %arg0, %arg1 : i32, i32
  }
  func.func @transform_1(%arg0: i32, %arg1: i32) -> (i32, i32) {
    %c0_i32 = arith.constant 0 : i32
    %c0_i32_0 = arith.constant 0 : i32
    return %arg0, %c0_i32 : i32, i32
  }
  func.func @transform_2(%arg0: i32, %arg1: i32) -> (i32, i32, i32) {
    %c0_i32 = arith.constant 0 : i32
    %c0_i32_0 = arith.constant 0 : i32
    %c0_i32_1 = arith.constant 0 : i32
    return %arg0, %c0_i32, %c0_i32_0 : i32, i32, i32
  }
}

</mosaic_0001>

<bundles_post_ra>
// kernel: tpu_custom_call.1
= control target key start
LH: loop header
LB: loop body
LE: loop exit
PB: predicated region body
PF: predicated region fallthrough
CT: control target
= control target key end

     0   :  { %s136_s0 = inlined_call_operand.vmem [shape: f32[2,8], index: 0, kind: input, shape index: {}]   ;;  %s137_s1 = inlined_call_operand.vmem [shape: f32[2,1], index: 1, kind: input, shape index: {}]   ;;  %s138_s2 = inlined_call_operand.hbm [shape: f32[1,8,128], index: 2, kind: output, shape index: {}]  }
   0x1   :  { %v18_v0 = vld [vmem:[%s137_s1] sm:$0xff] }
   0x2   :  { %7 = vsyncpa [#allocation4], 0  ;;  %v101_v1 = vmov 0   ;;  %v31_v2 = vlaneseq  ;;  %v17_v5 = vld [vmem:[%s136_s0] sm:$0xff]  ;;  %s102_s13 = smov [#allocation3]  }
   0x3   :  { %76 = vset.pattern.permute.xlu0 %v101_v1  ;;  %s66_s14 = sshll.u32 %s102_s13, 4  ;;  %s67_s14 = int_to_ptr.vmem [resolvable:$true] %s66_s14 }
   0x4   :  { %21 = vperm.xlu0 %76, %v18_v0   ;;  %v32_v3 = vshrl.u32 %v31_v2, 7  ;;  %v39_v4 = vand.u32 127, %v31_v2  ;;  %s77_s1 = scalar_lea.vmem %s67_s14, 128  ;;  %p82_p1 = scmp.lt.s32.totalorder %s67_s14, %s67_s14 }
   0x5   :  { %p78_p0 = scmp.ne.s32.totalorder %s67_s14, %s77_s1  ;;  %p83_p2 = scmp.lt.s32.totalorder %s77_s1, %s77_s1 }
   0x6   :  { %vm35_vm0 = vcmp.lt.s32.totalorder %v32_v3, 2  ;;  %vm42_vm1 = vcmp.lt.s32.totalorder %v39_v4, 8 }
   0x7   :  { %p84_p3 = por %p83_p2, %p82_p1 }
   0x9   :  { %p85_p4 = pnand %p84_p3, %p78_p0 }
  0x83   :  { %v22_v6 = vpop.permute.xlu0 %21 }
  0x84   :  { %v24_v7 = vsub.f32 %v22_v6, %v17_v5 }
  0x86   :  { %v36_v8 = vsel %vm35_vm0, %v24_v7, 0.0 }
  0x87   :  { %v43_v9 = vsel %vm42_vm1, %v36_v8, 0.0 }
  0x88   :  { %v44_v10 = vmul.f32 %v43_v9, %v43_v9 }
  0x8a   :  { %59 = vst [vmem:[#allocation3] sm:$0xff] %v44_v10 }
  0x8b   :  { %88 = shalt.err (!%p85_p4)
}
  0x8c   :  { %s89_s16 = scalar_lea.hbm %s138_s2, 128 }
  0x8d   :  { %p90_p5 = scmp.ne.s32.totalorder %s138_s2, %s89_s16  ;;  %p93_p6 = scmp.lt.u32.totalorder %s89_s16, %s138_s2 }
  0x8f   :  { %p95_p7 = pnand %p93_p6, %p90_p5 }
  0x91   :  { %98 = shalt.err (!%p95_p7)
}
  0x92   :  { %69 = dma.vmem_to_hbm [thread:$0]  %s67_s14, 128, %s138_s2, [#allocation4]  }
  0x93   :  { %99 = dma.done.wait [#allocation4], 128  }
  0x94   :  { %100 = vsyncadd [#allocation4], 4294967168 }
  0x95   :  { %73 = vsyncpa [#allocation4], 1 }

</bundles_post_ra>
